<compile_context>
chip_gen: v7x
topology: tpu7x:2x2x1
jax: 0.10.0
libtpu: 0.0.40
codegen_flags: <defaults>
</compile_context>

<pallas_src>
import functools

import numpy as np
import jax
import jax.numpy as jnp
from jax.experimental import pallas as pl
from jax.experimental.pallas import tpu as pltpu

# (di, dj) source offsets implied by the five pad configs + final crop.
_OFFSETS = ((1, 1), (0, 1), (-1, 1), (-1, 0), (-1, -1))
# torch F.pad configs (left, right, top, bottom) -- used only by the reference.
_PADS = ((0, 2, 0, 2), (0, 2, 1, 1), (0, 2, 2, 0), (1, 1, 2, 0), (2, 0, 2, 0))

_ROLL_DIRN = None  # +1 if pltpu.roll(v, t)[i] == v[(i+t)%n], -1 if == v[(i-t)%n]


def _roll_direction():
    """One-time probe of pltpu.roll's rotation direction, cached in a module global.

    Runs a trivial pallas_call once (eagerly warmed in __main__ before any jit).
    Wrapped in try/except so environments without a live TPU fall back to the
    np.roll-compatible convention instead of raising.
    """
    global _ROLL_DIRN
    if _ROLL_DIRN is not None:
        return _ROLL_DIRN
    try:
        def probe(x_ref, o_ref):
            o_ref[...] = pltpu.roll(x_ref[...], 1, axis=1)

        with jax.ensure_compile_time_eval():
            v = jnp.broadcast_to(jnp.arange(128, dtype=jnp.float32), (8, 128))
            out = pl.pallas_call(
                probe, out_shape=jax.ShapeDtypeStruct((8, 128), jnp.float32))(v)
            _ROLL_DIRN = 1 if int(jax.device_get(out)[0, 0]) == 1 else -1
    except Exception:
        _ROLL_DIRN = -1  # fallback: assume np.roll semantics (out[i] = x[i - shift])
    return _ROLL_DIRN


def _branch_tables(H, W):
    """Static per-branch tables: flat shifts and destination-validity masks (5, HW)."""
    i = np.arange(H)[:, None]
    j = np.arange(W)[None, :]
    shifts, masks = [], []
    for di, dj in _OFFSETS:
        valid = (i + di >= 0) & (i + di < H) & (j + dj >= 0) & (j + dj < W)
        shifts.append(di * W + dj)
        masks.append(valid.reshape(H * W))
    return tuple(shifts), np.stack(masks).astype(np.float32)


def _vmem_capacity_bytes():
    try:
        return int(pltpu.get_tpu_info().vmem_capacity_bytes)
    except Exception:
        return 64 << 20          # conservative (v7x per-TC) fallback


def _num_tensorcores():
    """Best-effort TensorCore-per-chip count (v7x has 2, v5e/v6e have 1)."""
    try:
        kind = jax.devices()[0].device_kind.lower()
        if "v7" in kind or "7x" in kind:
            return 2
    except Exception:
        pass
    return 1


def _pick_batch_block(N, HW, Cin, Cout_p, n_branch, x_item, out_item):
    """Images per grid step + matching VMEM footprint estimate.

    Footprint counts BOTH double-buffered x/out blocks, the (small) grid-constant
    operands, and the in-kernel f32 intermediates.  Single-TC chips take the largest
    block that fits (fewest ~0.35us grid steps); multi-TC chips prefer an even step
    count so both cores stay busy.
    """
    cap = _vmem_capacity_bytes()
    budget = int(0.40 * cap)

    const_bytes = 2 * 4 * (n_branch * Cout_p * Cin + Cout_p * n_branch
                           + n_branch * HW + n_branch * Cin * HW)
    live_bytes = 4 * HW * (2 * Cout_p + 2 * Cin)      # bias_term, acc, x, xk values

    def footprint(nb):
        return (2 * nb * Cin * HW * x_item            # double-buffered input block
                + 2 * nb * Cout_p * HW * out_item     # double-buffered output block
                + const_bytes + live_bytes)

    cands = [nb for nb in range(1, N + 1) if N % nb == 0 and footprint(nb) <= budget]
    if not cands:
        cands = [1]
    n_tc = _num_tensorcores()
    if n_tc > 1:
        even = [nb for nb in cands if (N // nb) >= n_tc and (N // nb) % n_tc == 0]
        nb = max(even) if even else max(cands)
    else:
        nb = max(cands)

    fp = footprint(nb)
    vmem_limit = int(min(max(32 << 20, fp * 3 // 2), int(cap * 0.75)))
    return nb, vmem_limit


def _make_kernel(n_branch, nb, roll_amts, cdt):
    def kernel(x_ref, w_ref, bw_ref, m2_ref, mx_ref, o_ref):
        # Bias term (shared by all images in this block):
        #   bias_term[o, p] = sum_k valid_k(p) * b_k[o]   -- exact F.pad semantics.
        bias_term = jnp.dot(bw_ref[...], m2_ref[...],
                            preferred_element_type=jnp.float32)
        for img in range(nb):
            x = x_ref[img].astype(jnp.float32)            # (Cin, HW)
            acc = bias_term
            for k in range(n_branch):
                a = roll_amts[k]
                # Flat lane roll realizes the (di,dj) spatial shift; positions whose
                # shifted source falls outside the image (incl. wrap-around) are
                # zeroed by the destination-validity mask -> F.pad zero fill.
                xk = pltpu.roll(x, a, axis=1) if a else x
                xk = xk * mx_ref[k]                       # (Cin, HW) 0/1 mask
                acc = acc + jnp.dot(w_ref[k], xk.astype(cdt),
                                    preferred_element_type=jnp.float32)
            o_ref[img] = acc.astype(o_ref.dtype)
    return kernel


def sdc_conv2d_1x1s_3_lt1(x, w, b, compute_dtype=None):
    """Pallas forward.  x: (N, Cin, H, W); w: (5, Cin, Cout); b: (5, 1, Cout)."""
    N, Cin, H, W = x.shape
    n_branch, cin_w, Cout = w.shape
    assert n_branch == len(_OFFSETS) and cin_w == Cin and b.shape == (n_branch, 1, Cout)
    HW = H * W
    out_dtype = x.dtype
    cdt = jnp.dtype(compute_dtype) if compute_dtype is not None else jnp.dtype(jnp.float32)
    Cout_p = -(-Cout // 8) * 8                 # pad Cout to a sublane multiple

    shifts, dest_masks = _branch_tables(H, W)
    dirn = _roll_direction()
    roll_amts = tuple(int((dirn * s) % HW) for s in shifts)   # per-image lane rolls

    nb, vmem_limit = _pick_batch_block(
        N, HW, Cin, Cout_p, n_branch,
        jnp.dtype(x.dtype).itemsize, jnp.dtype(out_dtype).itemsize)
    steps = N // nb

    # ---- tiny constant operands (no activation-sized wrapper passes) ------------
    # Weights as (5, Cout_p, Cin): w3[k, o, c] = w[k, c, o]   (zero rows for padding).
    w3 = jnp.transpose(w, (0, 2, 1))
    w3 = jnp.pad(w3, ((0, 0), (0, Cout_p - Cout), (0, 0))).astype(cdt)
    # Bias as (Cout_p, 5) so the bias term is one small MXU matmul against the mask.
    bw = jnp.transpose(jnp.pad(b[:, 0, :].astype(jnp.float32),
                               ((0, 0), (0, Cout_p - Cout))))
    # Destination-validity masks: (5, HW) for the bias matmul, (5, Cin, HW) broadcast
    # copy for the per-branch elementwise masking of x (leading-dim indexed in-kernel).
    mask2d = jnp.asarray(dest_masks, jnp.float32)
    maskx = jnp.asarray(
        np.broadcast_to(dest_masks[:, None, :], (n_branch, Cin, HW)).astype(np.float32))

    # ---- native-layout pallas_call: free reshapes only, grid over batch blocks ----
    x_flat = x.reshape(N, Cin, HW)

    out_flat = pl.pallas_call(
        _make_kernel(n_branch, nb, roll_amts, cdt),
        out_shape=jax.ShapeDtypeStruct((N, Cout_p, HW), out_dtype),
        grid=(steps,),
        in_specs=[
            pl.BlockSpec((nb, Cin, HW), lambda n: (n, 0, 0)),
            pl.BlockSpec((n_branch, Cout_p, Cin), lambda n: (0, 0, 0)),
            pl.BlockSpec((Cout_p, n_branch), lambda n: (0, 0)),
            pl.BlockSpec((n_branch, HW), lambda n: (0, 0)),
            pl.BlockSpec((n_branch, Cin, HW), lambda n: (0, 0, 0)),
        ],
        out_specs=pl.BlockSpec((nb, Cout_p, HW), lambda n: (n, 0, 0)),
        compiler_params=pltpu.CompilerParams(
            dimension_semantics=("parallel",),
            vmem_limit_bytes=vmem_limit),
    )(x_flat, w3, bw, mask2d, maskx)

    out = out_flat.reshape(N, Cout_p, H, W)
    if Cout_p != Cout:
        out = out[:, :Cout]
    return out.astype(out_dtype)


def reference(x, w, b):
    """Pure-JAX transcription of the PyTorch forward (for verification)."""
    acc = None
    for k, (l, r, t, bo) in enumerate(_PADS):
        y = jnp.einsum("nchw,cd->ndhw", x, w[k]) + b[k, 0][None, :, None, None]
        yp = jnp.pad(y, ((0, 0), (0, 0), (t, bo), (l, r)))
        acc = yp if acc is None else acc + yp
    return acc[:, :, 1:-1, 1:-1]


if __name__ == "__main__":
    N, Cin, H, W = 2, 4, 16, 16      # module: SDCconv2d1x1s_3_Lt1(input=4, channel=8)
    Cout = 8

    key = jax.random.PRNGKey(0)
    kx, kw, kb = jax.random.split(key, 3)
    x = jax.random.normal(kx, (N, Cin, H, W), jnp.float32)
    w = jax.random.normal(kw, (5, Cin, Cout), jnp.float32) / jnp.sqrt(Cin)
    b = jax.random.normal(kb, (5, 1, Cout), jnp.float32) * 0.1

    _roll_direction()                 # resolve pltpu.roll convention eagerly (cached)
    ref = reference(x, w, b)

    out = jax.block_until_ready(jax.jit(sdc_conv2d_1x1s_3_lt1)(x, w, b))
    assert out.shape == (N, Cout, H, W), out.shape
    if not jnp.allclose(out, ref, atol=2e-3, rtol=2e-3):
        raise AssertionError("Pallas kernel (f32) output does not match reference")

    # bf16 MXU operands (f32 accumulation) -- MXU-native dtype on v6e/v7x.
    bf16_fn = jax.jit(functools.partial(sdc_conv2d_1x1s_3_lt1,
                                        compute_dtype=jnp.bfloat16))
    out_bf16 = jax.block_until_ready(bf16_fn(x, w, b))
    if not jnp.allclose(out_bf16, ref, atol=1e-1, rtol=1e-1):
        raise AssertionError("Pallas kernel (bf16) output does not match reference")

    print("KERNEL_OK")
</pallas_src>

<mosaic_0001>
module attributes {stable_mosaic.version = 11 : i64} {
  func.func @probe(%arg0: memref<8x128xf32, #tpu.memory_space<vmem>>, %arg1: memref<8x128xf32, #tpu.memory_space<vmem>>) attributes {dimension_semantics = [], scalar_prefetch = 0 : i64, scratch_operands = 0 : i64, tpu.core_type = #tpu.core_type<tc>} {
    %c0 = arith.constant 0 : index
    %c0_0 = arith.constant 0 : index
    %0 = vector.load %arg0[%c0, %c0_0] : memref<8x128xf32, #tpu.memory_space<vmem>>, vector<8x128xf32>
    %c1_i32 = arith.constant 1 : i32
    %1 = tpu.dynamic_rotate %0 by %c1_i32 dim 1 : vector<8x128xf32>, i32 -> vector<8x128xf32>
    %c0_1 = arith.constant 0 : index
    %c0_2 = arith.constant 0 : index
    %2 = vector.load %arg1[%c0_1, %c0_2] : memref<8x128xf32, #tpu.memory_space<vmem>>, vector<8x128xf32>
    tpu.vector_store %arg1[%c0_1, %c0_2], %1 {strides = array<i32>} : memref<8x128xf32, #tpu.memory_space<vmem>>, vector<8x128xf32>,
    return
  }
}

module attributes {stable_mosaic.version = 11 : i64} {
  func.func @kernel(%arg0: i32, %arg1: memref<2x4x256xf32, #tpu.memory_space<vmem>>, %arg2: memref<5x8x4xf32, #tpu.memory_space<vmem>>, %arg3: memref<8x5xf32, #tpu.memory_space<vmem>>, %arg4: memref<5x256xf32, #tpu.memory_space<vmem>>, %arg5: memref<5x4x256xf32, #tpu.memory_space<vmem>>, %arg6: memref<2x8x256xf32, #tpu.memory_space<vmem>>) attributes {dimension_semantics = [#tpu.dimension_semantics<parallel>], iteration_bounds = array<i64: 1>, scalar_prefetch = 0 : i64, scratch_operands = 0 : i64, tpu.core_type = #tpu.core_type<tc>, window_params = [{transform_indices = @transform_0, window_bounds = array<i64: 2, 4, 256>}, {pipeline_mode = #tpu.pipeline_mode<synchronous>, transform_indices = @transform_1, window_bounds = array<i64: 5, 8, 4>}, {pipeline_mode = #tpu.pipeline_mode<synchronous>, transform_indices = @transform_2, window_bounds = array<i64: 8, 5>}, {pipeline_mode = #tpu.pipeline_mode<synchronous>, transform_indices = @transform_3, window_bounds = array<i64: 5, 256>}, {pipeline_mode = #tpu.pipeline_mode<synchronous>, transform_indices = @transform_4, window_bounds = array<i64: 5, 4, 256>}, {transform_indices = @transform_5, window_bounds = array<i64: 2, 8, 256>}]} {
    %c0 = arith.constant 0 : index
    %c0_0 = arith.constant 0 : index
    %0 = vector.load %arg3[%c0, %c0_0] : memref<8x5xf32, #tpu.memory_space<vmem>>, vector<8x5xf32>
    %c0_1 = arith.constant 0 : index
    %c0_2 = arith.constant 0 : index
    %1 = vector.load %arg4[%c0_1, %c0_2] : memref<5x256xf32, #tpu.memory_space<vmem>>, vector<5x256xf32>
    %cst = arith.constant dense<0.000000e+00> : vector<8x256xf32>
    %2 = tpu.matmul %0, %1, %cst {dimension_numbers = #tpu.dot_dimension_numbers<[1], [0], [0], [1], [0, 0, 1, 1], [], []>} : vector<8x5xf32>, vector<5x256xf32>, vector<8x256xf32> -> vector<8x256xf32>
    %c0_3 = arith.constant 0 : index
    %c0_4 = arith.constant 0 : index
    %c0_5 = arith.constant 0 : index
    %3 = vector.load %arg1[%c0_3, %c0_4, %c0_5] : memref<2x4x256xf32, #tpu.memory_space<vmem>>, vector<1x4x256xf32>
    %4 = vector.shape_cast %3 : vector<1x4x256xf32> to vector<4x256xf32>
    %c239_i32 = arith.constant 239 : i32
    %5 = tpu.dynamic_rotate %4 by %c239_i32 dim 1 : vector<4x256xf32>, i32 -> vector<4x256xf32>
    %c0_6 = arith.constant 0 : index
    %c0_7 = arith.constant 0 : index
    %c0_8 = arith.constant 0 : index
    %6 = vector.load %arg5[%c0_6, %c0_7, %c0_8] : memref<5x4x256xf32, #tpu.memory_space<vmem>>, vector<1x4x256xf32>
    %7 = vector.shape_cast %6 : vector<1x4x256xf32> to vector<4x256xf32>
    %8 = arith.mulf %5, %7 : vector<4x256xf32>
    %c0_9 = arith.constant 0 : index
    %c0_10 = arith.constant 0 : index
    %c0_11 = arith.constant 0 : index
    %9 = vector.load %arg2[%c0_9, %c0_10, %c0_11] : memref<5x8x4xf32, #tpu.memory_space<vmem>>, vector<1x8x4xf32>
    %10 = vector.shape_cast %9 : vector<1x8x4xf32> to vector<8x4xf32>
    %cst_12 = arith.constant dense<0.000000e+00> : vector<8x256xf32>
    %11 = tpu.matmul %10, %8, %cst_12 {dimension_numbers = #tpu.dot_dimension_numbers<[1], [0], [0], [1], [0, 0, 1, 1], [], []>} : vector<8x4xf32>, vector<4x256xf32>, vector<8x256xf32> -> vector<8x256xf32>
    %12 = arith.addf %2, %11 : vector<8x256xf32>
    %c255_i32 = arith.constant 255 : i32
    %13 = tpu.dynamic_rotate %4 by %c255_i32 dim 1 : vector<4x256xf32>, i32 -> vector<4x256xf32>
    %c1 = arith.constant 1 : index
    %c0_13 = arith.constant 0 : index
    %c0_14 = arith.constant 0 : index
    %14 = vector.load %arg5[%c1, %c0_13, %c0_14] : memref<5x4x256xf32, #tpu.memory_space<vmem>>, vector<1x4x256xf32>
    %15 = vector.shape_cast %14 : vector<1x4x256xf32> to vector<4x256xf32>
    %16 = arith.mulf %13, %15 : vector<4x256xf32>
    %c1_15 = arith.constant 1 : index
    %c0_16 = arith.constant 0 : index
    %c0_17 = arith.constant 0 : index
    %17 = vector.load %arg2[%c1_15, %c0_16, %c0_17] : memref<5x8x4xf32, #tpu.memory_space<vmem>>, vector<1x8x4xf32>
    %18 = vector.shape_cast %17 : vector<1x8x4xf32> to vector<8x4xf32>
    %cst_18 = arith.constant dense<0.000000e+00> : vector<8x256xf32>
    %19 = tpu.matmul %18, %16, %cst_18 {dimension_numbers = #tpu.dot_dimension_numbers<[1], [0], [0], [1], [0, 0, 1, 1], [], []>} : vector<8x4xf32>, vector<4x256xf32>, vector<8x256xf32> -> vector<8x256xf32>
    %20 = arith.addf %12, %19 : vector<8x256xf32>
    %c15_i32 = arith.constant 15 : i32
    %21 = tpu.dynamic_rotate %4 by %c15_i32 dim 1 : vector<4x256xf32>, i32 -> vector<4x256xf32>
    %c2 = arith.constant 2 : index
    %c0_19 = arith.constant 0 : index
    %c0_20 = arith.constant 0 : index
    %22 = vector.load %arg5[%c2, %c0_19, %c0_20] : memref<5x4x256xf32, #tpu.memory_space<vmem>>, vector<1x4x256xf32>
    %23 = vector.shape_cast %22 : vector<1x4x256xf32> to vector<4x256xf32>
    %24 = arith.mulf %21, %23 : vector<4x256xf32>
    %c2_21 = arith.constant 2 : index
    %c0_22 = arith.constant 0 : index
    %c0_23 = arith.constant 0 : index
    %25 = vector.load %arg2[%c2_21, %c0_22, %c0_23] : memref<5x8x4xf32, #tpu.memory_space<vmem>>, vector<1x8x4xf32>
    %26 = vector.shape_cast %25 : vector<1x8x4xf32> to vector<8x4xf32>
    %cst_24 = arith.constant dense<0.000000e+00> : vector<8x256xf32>
    %27 = tpu.matmul %26, %24, %cst_24 {dimension_numbers = #tpu.dot_dimension_numbers<[1], [0], [0], [1], [0, 0, 1, 1], [], []>} : vector<8x4xf32>, vector<4x256xf32>, vector<8x256xf32> -> vector<8x256xf32>
    %28 = arith.addf %20, %27 : vector<8x256xf32>
    %c16_i32 = arith.constant 16 : i32
    %29 = tpu.dynamic_rotate %4 by %c16_i32 dim 1 : vector<4x256xf32>, i32 -> vector<4x256xf32>
    %c3 = arith.constant 3 : index
    %c0_25 = arith.constant 0 : index
    %c0_26 = arith.constant 0 : index
    %30 = vector.load %arg5[%c3, %c0_25, %c0_26] : memref<5x4x256xf32, #tpu.memory_space<vmem>>, vector<1x4x256xf32>
    %31 = vector.shape_cast %30 : vector<1x4x256xf32> to vector<4x256xf32>
    %32 = arith.mulf %29, %31 : vector<4x256xf32>
    %c3_27 = arith.constant 3 : index
    %c0_28 = arith.constant 0 : index
    %c0_29 = arith.constant 0 : index
    %33 = vector.load %arg2[%c3_27, %c0_28, %c0_29] : memref<5x8x4xf32, #tpu.memory_space<vmem>>, vector<1x8x4xf32>
    %34 = vector.shape_cast %33 : vector<1x8x4xf32> to vector<8x4xf32>
    %cst_30 = arith.constant dense<0.000000e+00> : vector<8x256xf32>
    %35 = tpu.matmul %34, %32, %cst_30 {dimension_numbers = #tpu.dot_dimension_numbers<[1], [0], [0], [1], [0, 0, 1, 1], [], []>} : vector<8x4xf32>, vector<4x256xf32>, vector<8x256xf32> -> vector<8x256xf32>
    %36 = arith.addf %28, %35 : vector<8x256xf32>
    %c17_i32 = arith.constant 17 : i32
    %37 = tpu.dynamic_rotate %4 by %c17_i32 dim 1 : vector<4x256xf32>, i32 -> vector<4x256xf32>
    %c4 = arith.constant 4 : index
    %c0_31 = arith.constant 0 : index
    %c0_32 = arith.constant 0 : index
    %38 = vector.load %arg5[%c4, %c0_31, %c0_32] : memref<5x4x256xf32, #tpu.memory_space<vmem>>, vector<1x4x256xf32>
    %39 = vector.shape_cast %38 : vector<1x4x256xf32> to vector<4x256xf32>
    %40 = arith.mulf %37, %39 : vector<4x256xf32>
    %c4_33 = arith.constant 4 : index
    %c0_34 = arith.constant 0 : index
    %c0_35 = arith.constant 0 : index
    %41 = vector.load %arg2[%c4_33, %c0_34, %c0_35] : memref<5x8x4xf32, #tpu.memory_space<vmem>>, vector<1x8x4xf32>
    %42 = vector.shape_cast %41 : vector<1x8x4xf32> to vector<8x4xf32>
    %cst_36 = arith.constant dense<0.000000e+00> : vector<8x256xf32>
    %43 = tpu.matmul %42, %40, %cst_36 {dimension_numbers = #tpu.dot_dimension_numbers<[1], [0], [0], [1], [0, 0, 1, 1], [], []>} : vector<8x4xf32>, vector<4x256xf32>, vector<8x256xf32> -> vector<8x256xf32>
    %44 = arith.addf %36, %43 : vector<8x256xf32>
    %c0_37 = arith.constant 0 : index
    %c0_38 = arith.constant 0 : index
    %c0_39 = arith.constant 0 : index
    %45 = vector.load %arg6[%c0_37, %c0_38, %c0_39] : memref<2x8x256xf32, #tpu.memory_space<vmem>>, vector<1x8x256xf32>
    %46 = vector.shape_cast %45 : vector<1x8x256xf32> to vector<8x256xf32>
    %47 = vector.shape_cast %44 : vector<8x256xf32> to vector<1x8x256xf32>
    tpu.vector_store %arg6[%c0_37, %c0_38, %c0_39], %47 {strides = array<i32>} : memref<2x8x256xf32, #tpu.memory_space<vmem>>, vector<1x8x256xf32>,
    %c1_40 = arith.constant 1 : index
    %c0_41 = arith.constant 0 : index
    %c0_42 = arith.constant 0 : index
    %48 = vector.load %arg1[%c1_40, %c0_41, %c0_42] : memref<2x4x256xf32, #tpu.memory_space<vmem>>, vector<1x4x256xf32>
    %49 = vector.shape_cast %48 : vector<1x4x256xf32> to vector<4x256xf32>
    %c239_i32_43 = arith.constant 239 : i32
    %50 = tpu.dynamic_rotate %49 by %c239_i32_43 dim 1 : vector<4x256xf32>, i32 -> vector<4x256xf32>
    %c0_44 = arith.constant 0 : index
    %c0_45 = arith.constant 0 : index
    %c0_46 = arith.constant 0 : index
    %51 = vector.load %arg5[%c0_44, %c0_45, %c0_46] : memref<5x4x256xf32, #tpu.memory_space<vmem>>, vector<1x4x256xf32>
    %52 = vector.shape_cast %51 : vector<1x4x256xf32> to vector<4x256xf32>
    %53 = arith.mulf %50, %52 : vector<4x256xf32>
    %c0_47 = arith.constant 0 : index
    %c0_48 = arith.constant 0 : index
    %c0_49 = arith.constant 0 : index
    %54 = vector.load %arg2[%c0_47, %c0_48, %c0_49] : memref<5x8x4xf32, #tpu.memory_space<vmem>>, vector<1x8x4xf32>
    %55 = vector.shape_cast %54 : vector<1x8x4xf32> to vector<8x4xf32>
    %cst_50 = arith.constant dense<0.000000e+00> : vector<8x256xf32>
    %56 = tpu.matmul %55, %53, %cst_50 {dimension_numbers = #tpu.dot_dimension_numbers<[1], [0], [0], [1], [0, 0, 1, 1], [], []>} : vector<8x4xf32>, vector<4x256xf32>, vector<8x256xf32> -> vector<8x256xf32>
    %57 = arith.addf %2, %56 : vector<8x256xf32>
    %c255_i32_51 = arith.constant 255 : i32
    %58 = tpu.dynamic_rotate %49 by %c255_i32_51 dim 1 : vector<4x256xf32>, i32 -> vector<4x256xf32>
    %c1_52 = arith.constant 1 : index
    %c0_53 = arith.constant 0 : index
    %c0_54 = arith.constant 0 : index
    %59 = vector.load %arg5[%c1_52, %c0_53, %c0_54] : memref<5x4x256xf32, #tpu.memory_space<vmem>>, vector<1x4x256xf32>
    %60 = vector.shape_cast %59 : vector<1x4x256xf32> to vector<4x256xf32>
    %61 = arith.mulf %58, %60 : vector<4x256xf32>
    %c1_55 = arith.constant 1 : index
    %c0_56 = arith.constant 0 : index
    %c0_57 = arith.constant 0 : index
    %62 = vector.load %arg2[%c1_55, %c0_56, %c0_57] : memref<5x8x4xf32, #tpu.memory_space<vmem>>, vector<1x8x4xf32>
    %63 = vector.shape_cast %62 : vector<1x8x4xf32> to vector<8x4xf32>
    %cst_58 = arith.constant dense<0.000000e+00> : vector<8x256xf32>
    %64 = tpu.matmul %63, %61, %cst_58 {dimension_numbers = #tpu.dot_dimension_numbers<[1], [0], [0], [1], [0, 0, 1, 1], [], []>} : vector<8x4xf32>, vector<4x256xf32>, vector<8x256xf32> -> vector<8x256xf32>
    %65 = arith.addf %57, %64 : vector<8x256xf32>
    %c15_i32_59 = arith.constant 15 : i32
    %66 = tpu.dynamic_rotate %49 by %c15_i32_59 dim 1 : vector<4x256xf32>, i32 -> vector<4x256xf32>
    %c2_60 = arith.constant 2 : index
    %c0_61 = arith.constant 0 : index
    %c0_62 = arith.constant 0 : index
    %67 = vector.load %arg5[%c2_60, %c0_61, %c0_62] : memref<5x4x256xf32, #tpu.memory_space<vmem>>, vector<1x4x256xf32>
    %68 = vector.shape_cast %67 : vector<1x4x256xf32> to vector<4x256xf32>
    %69 = arith.mulf %66, %68 : vector<4x256xf32>
    %c2_63 = arith.constant 2 : index
    %c0_64 = arith.constant 0 : index
    %c0_65 = arith.constant 0 : index
    %70 = vector.load %arg2[%c2_63, %c0_64, %c0_65] : memref<5x8x4xf32, #tpu.memory_space<vmem>>, vector<1x8x4xf32>
    %71 = vector.shape_cast %70 : vector<1x8x4xf32> to vector<8x4xf32>
    %cst_66 = arith.constant dense<0.000000e+00> : vector<8x256xf32>
    %72 = tpu.matmul %71, %69, %cst_66 {dimension_numbers = #tpu.dot_dimension_numbers<[1], [0], [0], [1], [0, 0, 1, 1], [], []>} : vector<8x4xf32>, vector<4x256xf32>, vector<8x256xf32> -> vector<8x256xf32>
    %73 = arith.addf %65, %72 : vector<8x256xf32>
    %c16_i32_67 = arith.constant 16 : i32
    %74 = tpu.dynamic_rotate %49 by %c16_i32_67 dim 1 : vector<4x256xf32>, i32 -> vector<4x256xf32>
    %c3_68 = arith.constant 3 : index
    %c0_69 = arith.constant 0 : index
    %c0_70 = arith.constant 0 : index
    %75 = vector.load %arg5[%c3_68, %c0_69, %c0_70] : memref<5x4x256xf32, #tpu.memory_space<vmem>>, vector<1x4x256xf32>
    %76 = vector.shape_cast %75 : vector<1x4x256xf32> to vector<4x256xf32>
    %77 = arith.mulf %74, %76 : vector<4x256xf32>
    %c3_71 = arith.constant 3 : index
    %c0_72 = arith.constant 0 : index
    %c0_73 = arith.constant 0 : index
    %78 = vector.load %arg2[%c3_71, %c0_72, %c0_73] : memref<5x8x4xf32, #tpu.memory_space<vmem>>, vector<1x8x4xf32>
    %79 = vector.shape_cast %78 : vector<1x8x4xf32> to vector<8x4xf32>
    %cst_74 = arith.constant dense<0.000000e+00> : vector<8x256xf32>
    %80 = tpu.matmul %79, %77, %cst_74 {dimension_numbers = #tpu.dot_dimension_numbers<[1], [0], [0], [1], [0, 0, 1, 1], [], []>} : vector<8x4xf32>, vector<4x256xf32>, vector<8x256xf32> -> vector<8x256xf32>
    %81 = arith.addf %73, %80 : vector<8x256xf32>
    %c17_i32_75 = arith.constant 17 : i32
    %82 = tpu.dynamic_rotate %49 by %c17_i32_75 dim 1 : vector<4x256xf32>, i32 -> vector<4x256xf32>
    %c4_76 = arith.constant 4 : index
    %c0_77 = arith.constant 0 : index
    %c0_78 = arith.constant 0 : index
    %83 = vector.load %arg5[%c4_76, %c0_77, %c0_78] : memref<5x4x256xf32, #tpu.memory_space<vmem>>, vector<1x4x256xf32>
    %84 = vector.shape_cast %83 : vector<1x4x256xf32> to vector<4x256xf32>
    %85 = arith.mulf %82, %84 : vector<4x256xf32>
    %c4_79 = arith.constant 4 : index
    %c0_80 = arith.constant 0 : index
    %c0_81 = arith.constant 0 : index
    %86 = vector.load %arg2[%c4_79, %c0_80, %c0_81] : memref<5x8x4xf32, #tpu.memory_space<vmem>>, vector<1x8x4xf32>
    %87 = vector.shape_cast %86 : vector<1x8x4xf32> to vector<8x4xf32>
    %cst_82 = arith.constant dense<0.000000e+00> : vector<8x256xf32>
    %88 = tpu.matmul %87, %85, %cst_82 {dimension_numbers = #tpu.dot_dimension_numbers<[1], [0], [0], [1], [0, 0, 1, 1], [], []>} : vector<8x4xf32>, vector<4x256xf32>, vector<8x256xf32> -> vector<8x256xf32>
    %89 = arith.addf %81, %88 : vector<8x256xf32>
    %c1_83 = arith.constant 1 : index
    %c0_84 = arith.constant 0 : index
    %c0_85 = arith.constant 0 : index
    %90 = vector.load %arg6[%c1_83, %c0_84, %c0_85] : memref<2x8x256xf32, #tpu.memory_space<vmem>>, vector<1x8x256xf32>
    %91 = vector.shape_cast %90 : vector<1x8x256xf32> to vector<8x256xf32>
    %92 = vector.shape_cast %89 : vector<8x256xf32> to vector<1x8x256xf32>
    tpu.vector_store %arg6[%c1_83, %c0_84, %c0_85], %92 {strides = array<i32>} : memref<2x8x256xf32, #tpu.memory_space<vmem>>, vector<1x8x256xf32>,
    return
  }
  func.func @transform_0(%arg0: i32) -> (i32, i32, i32) {
    %c0_i32 = arith.constant 0 : i32
    %c0_i32_0 = arith.constant 0 : i32
    %c0_i32_1 = arith.constant 0 : i32
    return %arg0, %c0_i32, %c0_i32_0 : i32, i32, i32
  }
  func.func @transform_1(%arg0: i32) -> (i32, i32, i32) {
    %c0_i32 = arith.constant 0 : i32
    %c0_i32_0 = arith.constant 0 : i32
    %c0_i32_1 = arith.constant 0 : i32
    %c0_i32_2 = arith.constant 0 : i32
    return %c0_i32, %c0_i32_0, %c0_i32_1 : i32, i32, i32
  }
  func.func @transform_2(%arg0: i32) -> (i32, i32) {
    %c0_i32 = arith.constant 0 : i32
    %c0_i32_0 = arith.constant 0 : i32
    %c0_i32_1 = arith.constant 0 : i32
    return %c0_i32, %c0_i32_0 : i32, i32
  }
  func.func @transform_3(%arg0: i32) -> (i32, i32) {
    %c0_i32 = arith.constant 0 : i32
    %c0_i32_0 = arith.constant 0 : i32
    %c0_i32_1 = arith.constant 0 : i32
    return %c0_i32, %c0_i32_0 : i32, i32
  }
  func.func @transform_4(%arg0: i32) -> (i32, i32, i32) {
    %c0_i32 = arith.constant 0 : i32
    %c0_i32_0 = arith.constant 0 : i32
    %c0_i32_1 = arith.constant 0 : i32
    %c0_i32_2 = arith.constant 0 : i32
    return %c0_i32, %c0_i32_0, %c0_i32_1 : i32, i32, i32
  }
  func.func @transform_5(%arg0: i32) -> (i32, i32, i32) {
    %c0_i32 = arith.constant 0 : i32
    %c0_i32_0 = arith.constant 0 : i32
    %c0_i32_1 = arith.constant 0 : i32
    return %arg0, %c0_i32, %c0_i32_0 : i32, i32, i32
  }
}

</mosaic_0001>

<bundles_post_ra>
// kernel: tpu_custom_call.1
= control target key start
LH: loop header
LB: loop body
LE: loop exit
PB: predicated region body
PF: predicated region fallthrough
CT: control target
= control target key end

     0   :  { %6 = vsyncpa [#allocation3], 0  ;;  %s128_s0 = inlined_call_operand.hbm [shape: f32[8,128], index: 0, kind: input, shape index: {}]   ;;  %s129_s1 = inlined_call_operand.hbm [shape: f32[8,128], index: 1, kind: output, shape index: {}]  }
   0x1   :  { %7 = vsyncpa [#allocation4], 0  ;;  %s91_s6 = smov [#allocation2]   ;;  %s43_s10 = scalar_lea.hbm %s128_s0, 128 }
   0x2   :  { %s14_s7 = sshll.u32 %s91_s6, 4  ;;  %p44_p0 = scmp.ne.s32.totalorder %s128_s0, %s43_s10  ;;  %s15_s7 = int_to_ptr.vmem [resolvable:$true] %s14_s7 }
   0x3   :  { %p47_p1 = scmp.lt.u32.totalorder %s43_s10, %s128_s0 }
   0x5   :  { %p49_p2 = pnand %p47_p1, %p44_p0 }
   0x7   :  { %52 = shalt.err (!%p49_p2)
}
   0x8   :  { %s53_s15 = scalar_lea.vmem %s15_s7, 128  ;;  %p58_p4 = scmp.lt.s32.totalorder %s15_s7, %s15_s7 }
   0x9   :  { %p54_p3 = scmp.ne.s32.totalorder %s15_s7, %s53_s15  ;;  %p59_p5 = scmp.lt.s32.totalorder %s53_s15, %s53_s15 }
   0xb   :  { %p60_p6 = por %p59_p5, %p58_p4 }
   0xd   :  { %p61_p7 = pnand %p60_p6, %p54_p3 }
   0xf   :  { %64 = shalt.err (!%p61_p7)
}
  0x10   :  { %17 = dma.hbm_to_vmem [thread:$0]  %s128_s0, 128, %s15_s7, [#allocation3]  }
  0x11   :  { %87 = dma.done.wait [#allocation3], 128  }
  0x12   :  { %88 = vsyncadd [#allocation3], 4294967168  ;;  %v21_v0 = vld [vmem:[#allocation2] sm:$0xff]  ;;  %s92_s18 = smov 1   ;;  %s93_s19 = smov [#allocation5]  }
  0x13   :  { %22 = vrot.lane.b32.xlu0 %v21_v0, %s92_s18  ;;  %s31_s20 = sshll.u32 %s93_s19, 4  ;;  %s32_s20 = int_to_ptr.vmem [resolvable:$true] %s31_s20 }
  0x14   :  { %s65_s21 = scalar_lea.vmem %s32_s20, 128  ;;  %p70_p9 = scmp.lt.s32.totalorder %s32_s20, %s32_s20 }
  0x15   :  { %p66_p8 = scmp.ne.s32.totalorder %s32_s20, %s65_s21  ;;  %p71_p10 = scmp.lt.s32.totalorder %s65_s21, %s65_s21 }
  0x17   :  { %p72_p11 = por %p71_p10, %p70_p9 }
  0x19   :  { %p73_p12 = pnand %p72_p11, %p66_p8 }
  0x85   :  { %v23_v1 = vpop.permute.xlu0 %22 }
  0x86   :  { %24 = vst [vmem:[#allocation5] sm:$0xff] %v23_v1 }
  0x87   :  { %76 = shalt.err (!%p73_p12)
}
  0x88   :  { %s77_s0 = scalar_lea.hbm %s129_s1, 128 }
  0x89   :  { %p78_p13 = scmp.ne.s32.totalorder %s129_s1, %s77_s0  ;;  %p81_p0 = scmp.lt.u32.totalorder %s77_s0, %s129_s1 }
  0x8b   :  { %p83_p1 = pnand %p81_p0, %p78_p13 }
  0x8d   :  { %86 = shalt.err (!%p83_p1)
}
  0x8e   :  { %34 = dma.vmem_to_hbm [thread:$0]  %s32_s20, 128, %s129_s1, [#allocation4]  }
  0x8f   :  { %89 = dma.done.wait [#allocation4], 128  }
  0x90   :  { %90 = vsyncadd [#allocation4], 4294967168 }
  0x91   :  { %38 = vsyncpa [#allocation3], 1 }
  0x92   :  { %39 = vsyncpa [#allocation4], 1 }

// kernel: sdc_conv2d_1x1s_3_lt1.1
= control target key start
LH: loop header
LB: loop body
LE: loop exit
PB: predicated region body
PF: predicated region fallthrough
CT: control target
= control target key end

     0   :  { %vm27_vm0 = vcmask 1044480   ;;  %v1175_v3 = vmov 0.0   ;;  %s1176_s24 = smov 111   ;;  %vm23_vm1 = vcmask 39936   ;;  %s1177_s28 = smov 127   ;;  %v113_v8 = vlaneseq  ;;  %s1350_s0 = inlined_call_operand.vmem [shape: f32[2,4,256], index: 0, kind: input, shape index: {}]   ;;  %s1351_s3 = inlined_call_operand.vmem [shape: f32[5,256], index: 3, kind: input, shape index: {}]   ;;  %s1352_s2 = inlined_call_operand.vmem [shape: f32[8,5], index: 2, kind: input, shape index: {}]   ;;  %s1353_s4 = inlined_call_operand.vmem [shape: f32[5,4,256], index: 4, kind: input, shape index: {}]   ;;  %s1354_s1 = inlined_call_operand.vmem [shape: f32[5,8,4], index: 1, kind: input, shape index: {}]   ;;  %s1355_s5 = inlined_call_operand.vmem [shape: f32[2,8,256], index: 5, kind: output, shape index: {}]  }
   0x1   :  { %v1116_v0 = vld [vmem:[%s1350_s0 + $0x8] sm:$0xff]  ;;  %v105_v1 = vld [vmem:[%s1350_s0] sm:$0xff]  ;;  %98 = vmatprep.mubr.f32.mxu0 %v1175_v3  ;;  %200 = vmatprep.mubr.f32.mxu1 %v1175_v3  ;;  %s1179_s29 = smov 16   ;;  %vm129_vm3 = vcmask 1043456   ;;  %vm125_vm5 = vcmask 31744   ;;  %v1101_v33 = vld [vmem:[%s1353_s4 + $0x10] sm:$0xff] }
   0x2   :  { %v22_v2 = vld [vmem:[%s1351_s3 + $0x8] sm:$0x1f]  ;;  %608 = vrot.lane.b32.xlu1 %v1116_v0, %s1176_s24  ;;  %109 = vrot.lane.b32.xlu0 %v105_v1, %s1176_s24  ;;  %v606_v4 = vcombine.high %v1116_v0, %v1116_v0  ;;  %v107_v5 = vcombine.high %v105_v1, %v105_v1  ;;  %v21_v6 = vld [vmem:[%s1351_s3] sm:$0x1f]  ;;  %s1178_s3 = smov 15   ;;  %v1231_v9 = vand.u32 127, %v113_v8  ;;  %v317_v40 = vcombine.high %v1101_v33, %v1101_v33 }
   0x3   :  { %1090 = vmatprep.subr.msk.mxu0 %vm27_vm0, %v22_v2  ;;  %v20_v7 = vld [vmem:[%s1352_s2] sm:$0xff]  ;;  %s1180_s2 = smov 17   ;;  %v1096_v13 = vld [vmem:[%s1353_s4 + $0x8] sm:$0xff]  ;;  %v1106_v48 = vld [vmem:[%s1353_s4 + $0x18] sm:$0xff] }
   0x4   :  { %1091 = vmatpush1.msk.msra.mxu0 %vm27_vm0, %v21_v6  ;;  %v614_v10 = vld [vmem:[%s1353_s4] sm:$0xff]  ;;  %vm115_vm2 = vcmp.lt.s32.totalorder %v1231_v9, 111  ;;  %vm213_vm4 = vcmp.lt.s32.totalorder %v1231_v9, 127  ;;  %v219_v17 = vcombine.high %v1096_v13, %v1096_v13  ;;  %vm311_vm6 = vcmp.lt.s32.totalorder %v1231_v9, 15  ;;  %v1097_v41 = vld [vmem:[%s1354_s1 + $0x8] sm:$0xff]  ;;  %v1102_v56 = vld [vmem:[%s1354_s1 + $0x10] sm:$0xff] }
   0x5   :  { %1092 = vmatmul.mubr.msk.f32.vlgmr.msra.gmra.mrb[0].mxu0 %vm23_vm1, %v20_v7  ;;  %v616_v14 = vcombine.high %v614_v10, %v614_v10  ;;  %v124_v26 = vld [vmem:[%s1354_s1] sm:$0xff]  ;;  %vm409_vm7 = vcmp.lt.s32.totalorder %v1231_v9, 16  ;;  %v415_v55 = vcombine.high %v1106_v48, %v1106_v48  ;;  %vm507_vm8 = vcmp.lt.s32.totalorder %v1231_v9, 17  ;;  %v1107_v8 = vld [vmem:[%s1354_s1 + $0x18] sm:$0xff] }
   0x6   :  { %610 = vrot.lane.b32.xlu1 %v606_v4, %s1176_s24  ;;  %111 = vrot.lane.b32.xlu0 %v107_v5, %s1176_s24  ;;  %v1111_v63 = vld [vmem:[%s1353_s4 + $0x20] sm:$0xff] }
   0x7   :  { %694 = vmatprep.mubr.f32.mxu0 %v1175_v3  ;;  %v513_v7 = vcombine.high %v1111_v63, %v1111_v63 }
   0xa   :  { %211 = vrot.lane.b32.xlu1 %v107_v5, %s1177_s28  ;;  %209 = vrot.lane.b32.xlu0 %v105_v1, %s1177_s28 }
   0xe   :  { %705 = vrot.lane.b32.xlu1 %v606_v4, %s1177_s28  ;;  %703 = vrot.lane.b32.xlu0 %v1116_v0, %s1177_s28 }
  0x12   :  { %309 = vrot.lane.b32.xlu1 %v107_v5, %s1178_s3  ;;  %307 = vrot.lane.b32.xlu0 %v105_v1, %s1178_s3 }
  0x16   :  { %800 = vrot.lane.b32.xlu1 %v606_v4, %s1178_s3  ;;  %798 = vrot.lane.b32.xlu0 %v1116_v0, %s1178_s3 }
  0x1a   :  { %407 = vrot.lane.b32.xlu1 %v107_v5, %s1179_s29  ;;  %405 = vrot.lane.b32.xlu0 %v105_v1, %s1179_s29 }
  0x1e   :  { %895 = vrot.lane.b32.xlu1 %v606_v4, %s1179_s29  ;;  %893 = vrot.lane.b32.xlu0 %v1116_v0, %s1179_s29 }
  0x22   :  { %505 = vrot.lane.b32.xlu1 %v107_v5, %s1180_s2  ;;  %503 = vrot.lane.b32.xlu0 %v105_v1, %s1180_s2 }
  0x26   :  { %990 = vrot.lane.b32.xlu1 %v606_v4, %s1180_s2  ;;  %988 = vrot.lane.b32.xlu0 %v1116_v0, %s1180_s2 }
  0x74   :  { %v609_v11 = vpop.permute.xlu1 %608  ;;  %v110_v12 = vpop.permute.xlu0 %109 }
  0x78   :  { %v611_v15 = vpop.permute.xlu1 %610  ;;  %v112_v16 = vpop.permute.xlu0 %111 }
  0x79   :  { %v612_v18 = vsel %vm115_vm2, %v609_v11, %v611_v15  ;;  %v613_v19 = vsel %vm115_vm2, %v611_v15, %v609_v11  ;;  %v116_v20 = vsel %vm115_vm2, %v110_v12, %v112_v16  ;;  %v117_v21 = vsel %vm115_vm2, %v112_v16, %v110_v12 }
  0x7a   :  { %v618_v22 = vmul.f32 %v614_v10, %v612_v18  ;;  %v619_v23 = vmul.f32 %v616_v14, %v613_v19  ;;  %v122_v24 = vmul.f32 %v614_v10, %v116_v20  ;;  %v123_v25 = vmul.f32 %v616_v14, %v117_v21 }
  0x7c   :  { %1117 = vmatprep.subr.msk.mxu0 %vm129_vm3, %v619_v23  ;;  %v212_v27 = vpop.permute.xlu1 %211  ;;  %1093 = vmatprep.subr.msk.mxu1 %vm129_vm3, %v123_v25  ;;  %v210_v28 = vpop.permute.xlu0 %209 }
  0x7d   :  { %v214_v29 = vsel %vm213_vm4, %v210_v28, %v212_v27  ;;  %v215_v30 = vsel %vm213_vm4, %v212_v27, %v210_v28  ;;  %1094 = vmatpush1.msk.msra.mxu1 %vm129_vm3, %v122_v24  ;;  %1118 = vmatpush1.msk.msra.mxu0 %vm129_vm3, %v618_v22  ;;  %v1112_v22 = vld [vmem:[%s1354_s1 + $0x20] sm:$0xff] }
  0x7e   :  { %v221_v31 = vmul.f32 %v1096_v13, %v214_v29  ;;  %v222_v32 = vmul.f32 %v219_v17, %v215_v30  ;;  %1095 = vmatmul.mubr.msk.f32.vlgmr.msra.gmra.mrb[0].mxu1 %vm125_vm5, %v124_v26  ;;  %1119 = vmatmul.mubr.msk.f32.vlgmr.msra.gmra.mrb[2].mxu0 %vm125_vm5, %v124_v26 }
  0x7f   :  { %298 = vmatprep.mubr.f32.mxu1 %v1175_v3  ;;  %789 = vmatprep.mubr.f32.mxu0 %v1175_v3 }
  0x80   :  { %v706_v34 = vpop.permute.xlu1 %705  ;;  %1098 = vmatprep.subr.msk.mxu1 %vm129_vm3, %v222_v32  ;;  %v704_v35 = vpop.permute.xlu0 %703 }
  0x81   :  { %v707_v36 = vsel %vm213_vm4, %v704_v35, %v706_v34  ;;  %v708_v37 = vsel %vm213_vm4, %v706_v34, %v704_v35  ;;  %1099 = vmatpush1.msk.msra.mxu1 %vm129_vm3, %v221_v31 }
  0x82   :  { %v713_v38 = vmul.f32 %v1096_v13, %v707_v36  ;;  %v714_v39 = vmul.f32 %v708_v37, %v219_v17 }
  0x84   :  { %v310_v42 = vpop.permute.xlu1 %309  ;;  %1122 = vmatprep.subr.msk.mxu0 %vm129_vm3, %v714_v39  ;;  %v308_v43 = vpop.permute.xlu0 %307 }
  0x85   :  { %v312_v44 = vsel %vm311_vm6, %v308_v43, %v310_v42  ;;  %v313_v45 = vsel %vm311_vm6, %v310_v42, %v308_v43  ;;  %1123 = vmatpush1.msk.msra.mxu0 %vm129_vm3, %v713_v38 }
  0x86   :  { %v319_v46 = vmul.f32 %v1101_v33, %v313_v45  ;;  %v320_v47 = vmul.f32 %v317_v40, %v312_v44  ;;  %1100 = vmatmul.mubr.msk.f32.vlgmr.msra.gmra.mrb[0].mxu1 %vm125_vm5, %v1097_v41  ;;  %1124 = vmatmul.mubr.msk.f32.vlgmr.msra.gmra.mrb[2].mxu0 %vm125_vm5, %v1097_v41 }
  0x87   :  { %396 = vmatprep.mubr.f32.mxu1 %v1175_v3  ;;  %884 = vmatprep.mubr.f32.mxu0 %v1175_v3 }
  0x88   :  { %v801_v49 = vpop.permute.xlu1 %800  ;;  %1103 = vmatprep.subr.msk.mxu1 %vm129_vm3, %v320_v47  ;;  %v799_v50 = vpop.permute.xlu0 %798 }
  0x89   :  { %v802_v51 = vsel %vm311_vm6, %v799_v50, %v801_v49  ;;  %v803_v52 = vsel %vm311_vm6, %v801_v49, %v799_v50  ;;  %1104 = vmatpush1.msk.msra.mxu1 %vm129_vm3, %v319_v46 }
  0x8a   :  { %v808_v53 = vmul.f32 %v1101_v33, %v803_v52  ;;  %v809_v54 = vmul.f32 %v802_v51, %v317_v40 }
  0x8c   :  { %v408_v57 = vpop.permute.xlu1 %407  ;;  %1127 = vmatprep.subr.msk.mxu0 %vm129_vm3, %v809_v54  ;;  %v406_v58 = vpop.permute.xlu0 %405 }
  0x8d   :  { %v410_v59 = vsel %vm409_vm7, %v406_v58, %v408_v57  ;;  %v411_v60 = vsel %vm409_vm7, %v408_v57, %v406_v58  ;;  %1128 = vmatpush1.msk.msra.mxu0 %vm129_vm3, %v808_v53 }
  0x8e   :  { %v417_v61 = vmul.f32 %v1106_v48, %v411_v60  ;;  %v418_v62 = vmul.f32 %v415_v55, %v410_v59  ;;  %1105 = vmatmul.mubr.msk.f32.vlgmr.msra.gmra.mrb[0].mxu1 %vm125_vm5, %v1102_v56  ;;  %1129 = vmatmul.mubr.msk.f32.vlgmr.msra.gmra.mrb[2].mxu0 %vm125_vm5, %v1102_v56 }
  0x8f   :  { %494 = vmatprep.mubr.f32.mxu1 %v1175_v3  ;;  %979 = vmatprep.mubr.f32.mxu0 %v1175_v3 }
  0x90   :  { %v896_v0 = vpop.permute.xlu1 %895  ;;  %1108 = vmatprep.subr.msk.mxu1 %vm129_vm3, %v418_v62  ;;  %v894_v1 = vpop.permute.xlu0 %893 }
  0x91   :  { %v897_v2 = vsel %vm409_vm7, %v894_v1, %v896_v0  ;;  %v898_v4 = vsel %vm409_vm7, %v896_v0, %v894_v1  ;;  %1109 = vmatpush1.msk.msra.mxu1 %vm129_vm3, %v417_v61 }
  0x92   :  { %v903_v5 = vmul.f32 %v1106_v48, %v898_v4  ;;  %v904_v6 = vmul.f32 %v897_v2, %v415_v55 }
  0x94   :  { %v506_v10 = vpop.permute.xlu1 %505  ;;  %1132 = vmatprep.subr.msk.mxu0 %vm129_vm3, %v904_v6  ;;  %v504_v11 = vpop.permute.xlu0 %503 }
  0x95   :  { %v508_v12 = vsel %vm507_vm8, %v504_v11, %v506_v10  ;;  %v509_v13 = vsel %vm507_vm8, %v506_v10, %v504_v11  ;;  %1133 = vmatpush1.msk.msra.mxu0 %vm129_vm3, %v903_v5 }
  0x96   :  { %v515_v14 = vmul.f32 %v1111_v63, %v509_v13  ;;  %v516_v15 = vmul.f32 %v513_v7, %v508_v12  ;;  %1110 = vmatmul.mubr.msk.f32.vlgmr.msra.gmra.mrb[0].mxu1 %vm125_vm5, %v1107_v8  ;;  %1134 = vmatmul.mubr.msk.f32.vlgmr.msra.gmra.mrb[2].mxu0 %vm125_vm5, %v1107_v8 }
  0x97   :  { %592 = vmatprep.mubr.f32.mxu1 %v1175_v3  ;;  %1074 = vmatprep.mubr.f32.mxu0 %v1175_v3 }
  0x98   :  { %v991_v16 = vpop.permute.xlu1 %990  ;;  %1113 = vmatprep.subr.msk.mxu1 %vm129_vm3, %v516_v15  ;;  %v989_v17 = vpop.permute.xlu0 %988 }
  0x99   :  { %v992_v18 = vsel %vm507_vm8, %v989_v17, %v991_v16  ;;  %v993_v19 = vsel %vm507_vm8, %v991_v16, %v989_v17  ;;  %1114 = vmatpush1.msk.msra.mxu1 %vm129_vm3, %v515_v14 }
  0x9a   :  { %v998_v20 = vmul.f32 %v1111_v63, %v993_v19  ;;  %v999_v21 = vmul.f32 %v992_v18, %v513_v7 }
  0x9c   :  { %1137 = vmatprep.subr.msk.mxu0 %vm129_vm3, %v999_v21 }
  0x9d   :  { %1138 = vmatpush1.msk.msra.mxu0 %vm129_vm3, %v998_v20 }
  0x9e   :  { %1115 = vmatmul.mubr.msk.f32.vlgmr.msra.gmra.mrb[0].mxu1 %vm125_vm5, %v1112_v22  ;;  %1139 = vmatmul.mubr.msk.f32.vlgmr.msra.gmra.mrb[2].mxu0 %vm125_vm5, %v1112_v22 }
  0xd8   :  { %v100_v3 = vpop.f32.mrb[0].mxu0 }
  0xd9   :  { %v102_v23 = vpop.f32.mrb[1].mxu0 }
 0x171   :  { %v594_v9 = vpop.f32.mrb[0].mxu1  ;;  %v1076_v24 = vpop.f32.mrb[2].mxu0 }
 0x172   :  { %v1142_v25 = vadd.f32 %v594_v9, %v100_v3  ;;  %v1144_v26 = vadd.f32 %v1076_v24, %v100_v3  ;;  %v596_v27 = vpop.f32.mrb[1].mxu1  ;;  %v1078_v28 = vpop.f32.mrb[3].mxu0 }
 0x173   :  { %v1143_v29 = vadd.f32 %v596_v27, %v102_v23  ;;  %v1145_v30 = vadd.f32 %v1078_v28, %v102_v23 }
 0x174   :  { %601 = vst [vmem:[%s1355_s5] sm:$0xff] %v1142_v25  ;;  %1140 = vst [vmem:[%s1355_s5 + $0x10] sm:$0xff] %v1144_v26 }
 0x175   :  { %602 = vst [vmem:[%s1355_s5 + $0x8] sm:$0xff] %v1143_v29  ;;  %1141 = vst [vmem:[%s1355_s5 + $0x18] sm:$0xff] %v1145_v30 }

</bundles_post_ra>
